<compile_context>
chip_gen: v7x
topology: tpu7x:2x2x1
jax: 0.10.0
libtpu: 0.0.40
codegen_flags: <defaults>
</compile_context>

<pallas_src>
import functools

import jax
import jax.numpy as jnp
from jax.experimental import pallas as pl
from jax.experimental.pallas import tpu as pltpu


def mlp_kernel(xT_ref, w1_ref, b1_ref, w2_ref, b2_ref, w3_ref, b3_ref, o_ref):
    xT = xT_ref[...]                                               # [F, tb] bf16

    # ---- Linear(13 -> 64) with BatchNorm folded into W/b: [64,F] @ [F,tb] ----
    h = jnp.dot(w1_ref[...], xT, preferred_element_type=jnp.float32)
    h = h + b1_ref[...]                                            # [64,1] bcast
    h = jnp.maximum(h, 0.1 * h)                                    # LeakyReLU(0.1)

    # ---- Dropout(0.3): identity in eval mode ----

    # ---- Linear(64 -> 32): [32,64] @ [64,tb] (bf16 operands, f32 acc) ----
    h = jnp.dot(w2_ref[...], h.astype(w2_ref.dtype),
                preferred_element_type=jnp.float32)
    h = h + b2_ref[...]                                            # [32,1] bcast
    h = jnp.maximum(h, 0.1 * h)                                    # LeakyReLU(0.1)

    # ---- Linear(32 -> 1) as VPU multiply + sublane reduce -> lane-dense [1,tb]
    out = jnp.sum(h * w3_ref[...], axis=0, keepdims=True) + b3_ref[0, 0]

    # ---- Sigmoid on a lane-dense row, unmasked lane-dense store ----
    o_ref[...] = jax.nn.sigmoid(out)


def prepare_params(p, eps=1e-5, matmul_dtype=jnp.bfloat16):
    """Fold inference-mode BatchNorm1d into Linear1 and lay parameters out for
    the batch-on-lanes kernel. Done once, outside the hot path."""
    scale = p["gamma"] * jax.lax.rsqrt(p["var"] + eps)             # [1, H]
    w1f = p["w1"] * scale                                          # [F, H]
    b1f = (p["b1"] - p["mean"]) * scale + p["beta"]                # [1, H]
    return {
        "w1T": w1f.T.astype(matmul_dtype),                         # [H, F]
        "b1": b1f.T.astype(jnp.float32),                           # [H, 1]
        "w2T": p["w2"].T.astype(matmul_dtype),                     # [H2, H]
        "b2": p["b2"].T.astype(jnp.float32),                       # [H2, 1]
        "w3": p["w3"].astype(jnp.float32),                         # [H2, 1]
        "b3": p["b3"].astype(jnp.float32),                         # [1, 1] (SMEM)
    }


def _round_up(n, m):
    return ((n + m - 1) // m) * m


@functools.partial(jax.jit, static_argnames=("tile_b",))
def enhanced_attack_forward(x, kp, tile_b=2048):
    """x: [B, input_dim] f32, kp = prepare_params(params). Returns [B, 1] f32."""
    B, F = x.shape
    H = kp["w1T"].shape[0]
    H2 = kp["w2T"].shape[0]

    # Batch maps to the lane axis -> tile must be a multiple of 128.
    tb = max(128, min(tile_b, _round_up(B, 128)))
    if B > 128 and _round_up(B, tb) == tb:
        # Would be a single grid step: split so both v7x TensorCores get work.
        tb = max(128, _round_up((B + 1) // 2, 128))
    B_pad = _round_up(B, tb)

    # One HBM pass (fused by XLA): cast to bf16, transpose to [F, B], pad lanes.
    xT = x.astype(kp["w1T"].dtype).T
    if B_pad != B:
        xT = jnp.pad(xT, ((0, 0), (0, B_pad - B)))

    grid = (B_pad // tb,)
    in_specs = [
        pl.BlockSpec((F, tb), lambda i: (0, i)),            # x^T tile: streamed
        pl.BlockSpec((H, F), lambda i: (0, 0)),              # W1^T (BN-folded)
        pl.BlockSpec((H, 1), lambda i: (0, 0)),               # b1 (BN-folded)
        pl.BlockSpec((H2, H), lambda i: (0, 0)),              # W2^T
        pl.BlockSpec((H2, 1), lambda i: (0, 0)),              # b2
        pl.BlockSpec((H2, 1), lambda i: (0, 0)),              # w3 column
        pl.BlockSpec(memory_space=pltpu.MemorySpace.SMEM),    # b3 scalar
    ]
    out_spec = pl.BlockSpec((1, tb), lambda i: (0, i))        # lane-dense output

    out = pl.pallas_call(
        mlp_kernel,
        out_shape=jax.ShapeDtypeStruct((1, B_pad), jnp.float32),
        grid=grid,
        in_specs=in_specs,
        out_specs=out_spec,
        compiler_params=pltpu.CompilerParams(
            dimension_semantics=("parallel",)),               # megacore on v7x
    )(xT, kp["w1T"], kp["b1"], kp["w2T"], kp["b2"], kp["w3"], kp["b3"])

    return out.reshape(-1, 1)[:B]


def init_params(key, input_dim=13, hidden_dim=64):
    k1, k2, k3, k4, k5, k6 = jax.random.split(key, 6)
    h2 = hidden_dim // 2
    # Deterministic synthetic init (no checkpoint load). Weights stored as
    # [in_features, out_features] (transposed from PyTorch's [out, in]).
    return {
        "w1": jax.random.normal(k1, (input_dim, hidden_dim), jnp.float32) * 0.1,
        "b1": jax.random.normal(k2, (1, hidden_dim), jnp.float32) * 0.01,
        "gamma": jnp.ones((1, hidden_dim), jnp.float32) * 1.1,
        "beta": jnp.ones((1, hidden_dim), jnp.float32) * 0.05,
        "mean": jnp.zeros((1, hidden_dim), jnp.float32) + 0.02,
        "var": jnp.ones((1, hidden_dim), jnp.float32) * 0.9,
        "w2": jax.random.normal(k3, (hidden_dim, h2), jnp.float32) * 0.1,
        "b2": jax.random.normal(k4, (1, h2), jnp.float32) * 0.01,
        "w3": jax.random.normal(k5, (h2, 1), jnp.float32) * 0.1,
        "b3": jax.random.normal(k6, (1, 1), jnp.float32) * 0.01,
    }


def reference_forward(x, p):
    """Un-fused pure-JAX f32 reference matching the PyTorch module (eval mode)."""
    h = x @ p["w1"] + p["b1"]
    h = (h - p["mean"]) * jax.lax.rsqrt(p["var"] + 1e-5) * p["gamma"] + p["beta"]
    h = jnp.where(h > 0, h, 0.1 * h)
    h = h @ p["w2"] + p["b2"]
    h = jnp.where(h > 0, h, 0.1 * h)
    h = h @ p["w3"] + p["b3"]
    return jax.nn.sigmoid(h)


if __name__ == "__main__":
    key = jax.random.PRNGKey(0)
    kx, kp = jax.random.split(key)

    # B non-multiple of 128: exercises the padding path and the >=2-step grid.
    B, INPUT_DIM, HIDDEN_DIM = 200, 13, 64
    x = jax.random.normal(kx, (B, INPUT_DIM), jnp.float32)
    params = init_params(kp, INPUT_DIM, HIDDEN_DIM)
    kernel_params = prepare_params(params)

    out = enhanced_attack_forward(x, kernel_params)
    out = jax.block_until_ready(out)

    ref = reference_forward(x, params)
    assert out.shape == (B, 1), out.shape
    # bf16 matmul operands (f32 accumulation): slightly looser tolerance than
    # the pure-f32 reference.
    assert jnp.allclose(out, ref, atol=5e-3, rtol=5e-3), (
        float(jnp.max(jnp.abs(out - ref))))

    print("KERNEL_OK")
</pallas_src>

<mosaic_0001>
module attributes {stable_mosaic.version = 11 : i64} {
  func.func @mlp_kernel(%arg0: i32, %arg1: memref<13x128xbf16, #tpu.memory_space<vmem>>, %arg2: memref<64x13xbf16, #tpu.memory_space<vmem>>, %arg3: memref<64x1xf32, #tpu.memory_space<vmem>>, %arg4: memref<32x64xbf16, #tpu.memory_space<vmem>>, %arg5: memref<32x1xf32, #tpu.memory_space<vmem>>, %arg6: memref<32x1xf32, #tpu.memory_space<vmem>>, %arg7: memref<1x1xf32, #tpu.memory_space<smem>>, %arg8: memref<1x128xf32, #tpu.memory_space<vmem>>) attributes {dimension_semantics = [#tpu.dimension_semantics<parallel>], iteration_bounds = array<i64: 2>, scalar_prefetch = 0 : i64, scratch_operands = 0 : i64, tpu.core_type = #tpu.core_type<tc>, window_params = [{transform_indices = @transform_0, window_bounds = array<i64: 13, 128>}, {pipeline_mode = #tpu.pipeline_mode<synchronous>, transform_indices = @transform_1, window_bounds = array<i64: 64, 13>}, {pipeline_mode = #tpu.pipeline_mode<synchronous>, transform_indices = @transform_2, window_bounds = array<i64: 64, 1>}, {pipeline_mode = #tpu.pipeline_mode<synchronous>, transform_indices = @transform_3, window_bounds = array<i64: 32, 64>}, {pipeline_mode = #tpu.pipeline_mode<synchronous>, transform_indices = @transform_4, window_bounds = array<i64: 32, 1>}, {pipeline_mode = #tpu.pipeline_mode<synchronous>, transform_indices = @transform_5, window_bounds = array<i64: 32, 1>}, {transform_indices = @transform_6, window_bounds = array<i64: 1, 1>}, {transform_indices = @transform_7, window_bounds = array<i64: 1, 128>}]} {
    %c0 = arith.constant 0 : index
    %c0_0 = arith.constant 0 : index
    %0 = vector.load %arg1[%c0, %c0_0] : memref<13x128xbf16, #tpu.memory_space<vmem>>, vector<13x128xbf16>
    %c0_1 = arith.constant 0 : index
    %c0_2 = arith.constant 0 : index
    %1 = vector.load %arg2[%c0_1, %c0_2] : memref<64x13xbf16, #tpu.memory_space<vmem>>, vector<64x13xbf16>
    %cst = arith.constant dense<0.000000e+00> : vector<64x128xf32>
    %2 = tpu.matmul %1, %0, %cst {dimension_numbers = #tpu.dot_dimension_numbers<[1], [0], [0], [1], [0, 0, 1, 1], [], []>} : vector<64x13xbf16>, vector<13x128xbf16>, vector<64x128xf32> -> vector<64x128xf32>
    %c0_3 = arith.constant 0 : index
    %c0_4 = arith.constant 0 : index
    %3 = vector.load %arg3[%c0_3, %c0_4] : memref<64x1xf32, #tpu.memory_space<vmem>>, vector<64x1xf32>
    %4 = vector.broadcast %3 : vector<64x1xf32> to vector<64x128xf32>
    %5 = arith.addf %2, %4 : vector<64x128xf32>
    %cst_5 = arith.constant 1.000000e-01 : f32
    %6 = vector.broadcast %cst_5 : f32 to vector<64x128xf32>
    %7 = arith.mulf %6, %5 : vector<64x128xf32>
    %8 = arith.maximumf %5, %7 : vector<64x128xf32>
    %c0_6 = arith.constant 0 : index
    %c0_7 = arith.constant 0 : index
    %9 = vector.load %arg4[%c0_6, %c0_7] : memref<32x64xbf16, #tpu.memory_space<vmem>>, vector<32x64xbf16>
    %10 = arith.truncf %8 : vector<64x128xf32> to vector<64x128xbf16>
    %cst_8 = arith.constant dense<0.000000e+00> : vector<32x128xf32>
    %11 = tpu.matmul %9, %10, %cst_8 {dimension_numbers = #tpu.dot_dimension_numbers<[1], [0], [0], [1], [0, 0, 1, 1], [], []>} : vector<32x64xbf16>, vector<64x128xbf16>, vector<32x128xf32> -> vector<32x128xf32>
    %c0_9 = arith.constant 0 : index
    %c0_10 = arith.constant 0 : index
    %12 = vector.load %arg5[%c0_9, %c0_10] : memref<32x1xf32, #tpu.memory_space<vmem>>, vector<32x1xf32>
    %13 = vector.broadcast %12 : vector<32x1xf32> to vector<32x128xf32>
    %14 = arith.addf %11, %13 : vector<32x128xf32>
    %cst_11 = arith.constant 1.000000e-01 : f32
    %15 = vector.broadcast %cst_11 : f32 to vector<32x128xf32>
    %16 = arith.mulf %15, %14 : vector<32x128xf32>
    %17 = arith.maximumf %14, %16 : vector<32x128xf32>
    %c0_12 = arith.constant 0 : index
    %c0_13 = arith.constant 0 : index
    %18 = vector.load %arg6[%c0_12, %c0_13] : memref<32x1xf32, #tpu.memory_space<vmem>>, vector<32x1xf32>
    %19 = vector.broadcast %18 : vector<32x1xf32> to vector<32x128xf32>
    %20 = arith.mulf %17, %19 : vector<32x128xf32>
    %cst_14 = arith.constant dense<0.000000e+00> : vector<128xf32>
    %21 = vector.multi_reduction <add>, %20, %cst_14 [0] : vector<32x128xf32> to vector<128xf32>
    %22 = vector.shape_cast %21 : vector<128xf32> to vector<1x128xf32>
    %c0_15 = arith.constant 0 : index
    %c0_16 = arith.constant 0 : index
    %23 = memref.load %arg7[%c0_15, %c0_16] : memref<1x1xf32, #tpu.memory_space<smem>>
    %24 = vector.broadcast %23 : f32 to vector<1x128xf32>
    %25 = arith.addf %22, %24 : vector<1x128xf32>
    %26 = arith.negf %25 : vector<1x128xf32>
    %27 = math.exp %26 : vector<1x128xf32>
    %cst_17 = arith.constant 1.000000e+00 : f32
    %28 = vector.broadcast %cst_17 : f32 to vector<1x128xf32>
    %29 = arith.addf %28, %27 : vector<1x128xf32>
    %30 = arith.divf %28, %29 : vector<1x128xf32>
    %c0_18 = arith.constant 0 : index
    %c0_19 = arith.constant 0 : index
    %31 = vector.load %arg8[%c0_18, %c0_19] : memref<1x128xf32, #tpu.memory_space<vmem>>, vector<1x128xf32>
    tpu.vector_store %arg8[%c0_18, %c0_19], %30 {strides = array<i32>} : memref<1x128xf32, #tpu.memory_space<vmem>>, vector<1x128xf32>,
    return
  }
  func.func @transform_0(%arg0: i32) -> (i32, i32) {
    %c0_i32 = arith.constant 0 : i32
    %c0_i32_0 = arith.constant 0 : i32
    return %c0_i32, %arg0 : i32, i32
  }
  func.func @transform_1(%arg0: i32) -> (i32, i32) {
    %c0_i32 = arith.constant 0 : i32
    %c0_i32_0 = arith.constant 0 : i32
    %c0_i32_1 = arith.constant 0 : i32
    return %c0_i32, %c0_i32_0 : i32, i32
  }
  func.func @transform_2(%arg0: i32) -> (i32, i32) {
    %c0_i32 = arith.constant 0 : i32
    %c0_i32_0 = arith.constant 0 : i32
    %c0_i32_1 = arith.constant 0 : i32
    return %c0_i32, %c0_i32_0 : i32, i32
  }
  func.func @transform_3(%arg0: i32) -> (i32, i32) {
    %c0_i32 = arith.constant 0 : i32
    %c0_i32_0 = arith.constant 0 : i32
    %c0_i32_1 = arith.constant 0 : i32
    return %c0_i32, %c0_i32_0 : i32, i32
  }
  func.func @transform_4(%arg0: i32) -> (i32, i32) {
    %c0_i32 = arith.constant 0 : i32
    %c0_i32_0 = arith.constant 0 : i32
    %c0_i32_1 = arith.constant 0 : i32
    return %c0_i32, %c0_i32_0 : i32, i32
  }
  func.func @transform_5(%arg0: i32) -> (i32, i32) {
    %c0_i32 = arith.constant 0 : i32
    %c0_i32_0 = arith.constant 0 : i32
    %c0_i32_1 = arith.constant 0 : i32
    return %c0_i32, %c0_i32_0 : i32, i32
  }
  func.func @transform_6(%arg0: i32) -> (i32, i32) {
    %c0_i32 = arith.constant 0 : i32
    %c0_i32_0 = arith.constant 0 : i32
    %c0_i32_1 = arith.constant 0 : i32
    return %c0_i32, %c0_i32_0 : i32, i32
  }
  func.func @transform_7(%arg0: i32) -> (i32, i32) {
    %c0_i32 = arith.constant 0 : i32
    %c0_i32_0 = arith.constant 0 : i32
    return %c0_i32, %arg0 : i32, i32
  }
}

</mosaic_0001>

<bundles_post_ra>
// kernel: enhanced_attack_forward.1
= control target key start
LH: loop header
LB: loop body
LE: loop exit
PB: predicated region body
PF: predicated region fallthrough
CT: control target
= control target key end

     0   :  { %s1003_s0 = inlined_call_operand.vmem [shape: bf16[13,256], index: 0, kind: input, shape index: {}]   ;;  %s1004_s1 = inlined_call_operand.vmem [shape: bf16[64,13], index: 1, kind: input, shape index: {}]   ;;  %s1005_s2 = inlined_call_operand.vmem [shape: f32[64,1], index: 2, kind: input, shape index: {}]   ;;  %s1006_s3 = inlined_call_operand.vmem [shape: bf16[32,64], index: 3, kind: input, shape index: {}]   ;;  %s1007_s4 = inlined_call_operand.vmem [shape: f32[32,1], index: 4, kind: input, shape index: {}]   ;;  %s1008_s5 = inlined_call_operand.vmem [shape: f32[32,1], index: 5, kind: input, shape index: {}]   ;;  %s1009_s6 = inlined_call_operand.<no memory space> [shape: f32[1,1], index: 6, kind: input, shape index: {}]   ;;  %s1010_s7 = inlined_call_operand.vmem [shape: f32[1,256], index: 7, kind: output, shape index: {}]  }
   0x1   :  { %12 = sst [smem:[#allocation2]] %s1009_s6 }
   0x2   :  { %s877_s26 = smov 0   ;;  %s879_s27 = smov 0  }
   0x3   :  { %s881_s28 = smov 0  }
   0x4 LB: > { %s712_s6 = sadd.s32 4294967295, %s830_s28   ;;  %s894_s29 = sadd.s32 1, %s830_s28   ;;  %s830_s28 = sphi %s881_s28, %s1013_s28   ;;  %s826_s27 = sphi %s879_s27, %s1012_s27   ;;  %s822_s26 = sphi %s877_s26, %s1011_s26  }
   0x5   : > { %s22_s30 = ssub.s32 %s830_s28, %s894_s29  ;;  %s25_s8 = sadd.s32 1, %s826_s27 }
   0x6   : > { %p23_p0 = scmp.eq.s32.totalorder %s22_s30, 0  ;;  %p32_p1 = scmp.ne.s32.totalorder %s826_s27, %s822_s26 }
   0x7   : > { %p33_p2 = scmp.eq.s32.totalorder %s830_s28, 0  ;;  %p715_p4 = scmp.ge.s32.totalorder %s830_s28, 2 }
   0x8   : > { %s903_s9 = scalar_select %p23_p0, %s826_s27, %s25_s8  }
   0x9   : > { %p34_p3 = por %p33_p2, %p32_p1  ;;  %228 = sbr.rel (%p715_p4) target bundleno = 23 (0x17), region = 40 }
  0x10   : > { %231 = sbr.rel (!%p34_p3) target bundleno = 23 (0x17), region = 44  ;;  %s233_s10 = sand.u32 (%p34_p3), 1, %s826_s27  }
  0x11   : > { %s717_s11 = sshll.u32 (%p34_p3), %s830_s28, 2  ;;  %s716_s12 = sshll.u32 (%p34_p3), %s233_s10, 3 }
  0x12   : > { %s237_s15 = scalar_lea.vmem (%p34_p3), %s1003_s0, %s717_s11  ;;  %s235_s16 = scalar_lea.vmem (%p34_p3), [#allocation3], %s716_s12 }
  0x13   : > { %v253_v0 = vld [vmem:[%s237_s15] sm:$0xf] (%p34_p3)  ;;  %v255_v1 = vld [vmem:[%s237_s15 + $0x8] sm:$0xf] (%p34_p3) }
  0x14   : > { %254 = vst [vmem:[%s235_s16] sm:$0xf] (%p34_p3), %v253_v0  ;;  %256 = vst [vmem:[%s235_s16 + $0x4] sm:$0xf] (%p34_p3), %v255_v1 }
  0x17 PF: > { %p718_p5 = scmp.ge.s32.totalorder %s830_s28, 1  ;;  %p282_p6 = scmp.lt.s32.totalorder %s830_s28, 3 }
  0x19   : > { %p283_p7 = pnand %p718_p5, %p282_p6 }
  0x1a   : > { %s289_s17 = sand.u32 (!%p283_p7), 1, %s822_s26   ;;  %vm418_vm0 = vcmask (!%p283_p7), 1045504   ;;  %vm419_vm1 = vcmask (!%p283_p7), 1046528   ;;  %v832_v2 = vmov (!%p283_p7), 65535   ;;  %v798_v4 = vld [vmem:[%s1004_s1] sm:$0xff] (!%p283_p7)   ;;  %vm405_vm2 = vcmask (!%p283_p7), 105472  }
  0x1b   : > { %286 = sbr.rel (%p283_p7) target bundleno = 545 (0x221), region = 85  ;;  %s719_s18 = sshll.u32 (!%p283_p7), %s289_s17, 3  ;;  %v420_v3 = vsel (!%p283_p7), %vm418_vm0, 4294967295, %v832_v2  ;;  %749 = vmatprep.mubr.msk.bf16.mxu0 (!%p283_p7), %vm405_vm2, %v798_v4  ;;  %v833_v8 = vmov (!%p283_p7), 0   ;;  %v332_v9 = vld [vmem:[%s1005_s2] sm:$0xff] (!%p283_p7)  ;;  %v334_v10 = vld [vmem:[%s1005_s2 + $0x10] sm:$0xff] (!%p283_p7) }
  0x1c   : > { %v421_v5 = vsel (!%p283_p7), %vm419_vm1, %v420_v3, 0  ;;  %s291_s21 = scalar_lea.vmem (!%p283_p7), [#allocation3], %s719_s18  ;;  %795 = vset.pattern.permute.xlu0 (!%p283_p7), %v833_v8  ;;  %796 = vset.pattern.permute.xlu1 (!%p283_p7), %v833_v8  ;;  %v799_v11 = vld [vmem:[%s1004_s1 + $0x8] sm:$0xff] (!%p283_p7)   ;;  %v800_v12 = vld [vmem:[%s1004_s1 + $0x10] sm:$0xff] (!%p283_p7)   ;;  %v335_v14 = vld [vmem:[%s1005_s2 + $0x18] sm:$0xff] (!%p283_p7)  ;;  %vm548_vm3 = vcmask (!%p283_p7), 523264  }
  0x1d   : > { %v797_v6 = vld [vmem:[%s291_s21] sm:$0x7f] (!%p283_p7)   ;;  %342 = vperm.xlu0 (!%p283_p7), %795, %v332_v9   ;;  %352 = vperm.xlu1 (!%p283_p7), %796, %v334_v10   ;;  %v801_v17 = vld [vmem:[%s1004_s1 + $0x18] sm:$0xff] (!%p283_p7)   ;;  %v338_v18 = vld [vmem:[%s1005_s2 + $0x30] sm:$0xff] (!%p283_p7)  ;;  %s649_s26 = sld [smem:[#allocation2]] (!%p283_p7)  ;;  %p318_p8 = scmp.lt.s32.totalorder (!%p283_p7), %s712_s6, 1 }
  0x1e   : > { %v423_v7 = vand.u32 (!%p283_p7), %v797_v6, %v421_v5  ;;  %v333_v13 = vld [vmem:[%s1005_s2 + $0x8] sm:$0xff] (!%p283_p7)  ;;  %v336_v15 = vld [vmem:[%s1005_s2 + $0x20] sm:$0xff] (!%p283_p7)  ;;  %v339_v19 = vld [vmem:[%s1005_s2 + $0x38] sm:$0xff] (!%p283_p7) }
  0x1f   : > { %v337_v16 = vld [vmem:[%s1005_s2 + $0x28] sm:$0xff] (!%p283_p7)  ;;  %v514_v20 = vld [vmem:[%s1007_s4] sm:$0xff] (!%p283_p7)  ;;  %v516_v22 = vld [vmem:[%s1007_s4 + $0x10] sm:$0xff] (!%p283_p7) }
  0x20   : > { %747 = vmatprep.subr.bf16.mxu0 (!%p283_p7), %v423_v7  ;;  %v515_v21 = vld [vmem:[%s1007_s4 + $0x8] sm:$0xff] (!%p283_p7)  ;;  %v517_v23 = vld [vmem:[%s1007_s4 + $0x18] sm:$0xff] (!%p283_p7)  ;;  %v612_v24 = vld [vmem:[%s1008_s5] sm:$0xff] (!%p283_p7) }
  0x21   : > { %748 = vmatpush3.bf16.msra.mxu0 (!%p283_p7), %v423_v7  ;;  %347 = vperm.xlu0 (!%p283_p7), %795, %v333_v13   ;;  %v613_v25 = vld [vmem:[%s1008_s5 + $0x8] sm:$0xff] (!%p283_p7)  ;;  %v614_v26 = vld [vmem:[%s1008_s5 + $0x10] sm:$0xff] (!%p283_p7)  ;;  %v615_v27 = vld [vmem:[%s1008_s5 + $0x18] sm:$0xff] (!%p283_p7) }
  0x22   : > { %357 = vperm.xlu1 %796, %v335_v14   ;;  %v802_v28 = vld [vmem:[%s1006_s3] sm:$0xff]   ;;  %v803_v9 = vld [vmem:[%s1006_s3 + $0x8] sm:$0xff]   ;;  %s1015_s6 = smov (!%p318_p8, %s712_s6), 1 }
  0x23   : > { %765 = vmatprep.mubr.msk.bf16.mxu1 %vm548_vm3, %v802_v28  ;;  %s320_s10 = scalar_lea.vmem %s1010_s7, %s1015_s6 }
  0x24   : > { %750 = vmatmul.mubr.msk.bf16.vlgmr.msra.gmra.mrb[0].mxu0 %vm405_vm2, %v799_v11 }
  0x25   : > { %753 = vmatprep.mubr.msk.bf16.mxu0 %vm405_vm2, %v800_v12  ;;  %362 = vperm.xlu0 %795, %v336_v15  }
  0x26   : > { %367 = vperm.xlu1 %796, %v337_v16  }
  0x29   : > { %372 = vperm.xlu0 %795, %v338_v18  }
  0x2a   : > { %377 = vperm.xlu1 %796, %v339_v19  }
  0x2c   : > { %754 = vmatmul.mubr.msk.bf16.gmra.mrb[4].mxu0 %vm405_vm2, %v801_v17 }
  0x2d   : > { %520 = vperm.xlu0 %795, %v514_v20  }
  0x2e   : > { %525 = vperm.xlu1 %796, %v515_v21  }
  0x31   : > { %530 = vperm.xlu0 %795, %v516_v22  }
  0x32   : > { %535 = vperm.xlu1 %796, %v517_v23  }
  0x35   : > { %618 = vperm.xlu0 %795, %v612_v24  }
  0x36   : > { %623 = vperm.xlu1 %796, %v613_v25  }
  0x39   : > { %628 = vperm.xlu0 %795, %v614_v26  }
  0x3a   : > { %633 = vperm.xlu1 %796, %v615_v27  }
  0x9c   : > { %v343_v29 = vpop.permute.xlu0 %342  ;;  %v353_v30 = vpop.permute.xlu1 %352 }
  0xa0   : > { %v348_v31 = vpop.permute.xlu0 %347 }
  0xa1   : > { %v358_v32 = vpop.permute.xlu1 %357 }
  0xa4   : > { %v363_v36 = vpop.permute.xlu0 %362 }
  0xa5   : > { %v368_v42 = vpop.permute.xlu1 %367 }
  0xa8   : > { %v373_v49 = vpop.permute.xlu0 %372 }
  0xa9   : > { %v378_v56 = vpop.permute.xlu1 %377 }
  0xac   : > { %v521_v10 = vpop.permute.xlu0 %520 }
  0xad   : > { %v526_v11 = vpop.permute.xlu1 %525 }
  0xb0   : > { %v531_v12 = vpop.permute.xlu0 %530 }
  0xb1   : > { %v536_v14 = vpop.permute.xlu1 %535 }
  0xb4   : > { %v619_v24 = vpop.permute.xlu0 %618 }
  0xb5   : > { %v624_v28 = vpop.permute.xlu1 %623 }
  0xf7   : > { %v751_v33 = vpop.f32.mrb[0].mxu0 }
  0xf8   : > { %v468_v34 = vadd.f32 %v751_v33, %v353_v30  ;;  %v459_v35 = vpop.f32.mrb[1].mxu0 }
  0xf9   : > { %v460_v37 = vadd.f32 %v459_v35, %v343_v29  ;;  %v752_v38 = vpop.f32.mrb[2].mxu0 }
  0xfa   : > { %v492_v39 = vmul.f32 0.1, %v468_v34  ;;  %v471_v40 = vadd.f32 %v752_v38, %v358_v32  ;;  %v462_v41 = vpop.f32.mrb[3].mxu0 }
  0xfb   : > { %v490_v43 = vmul.f32 0.1, %v460_v37  ;;  %v463_v44 = vadd.f32 %v462_v41, %v348_v31 }
  0xfc   : > { %v493_v45 = vmul.f32 0.1, %v471_v40  ;;  %v500_v47 = vmax.f32 %v468_v34, %v492_v39  ;;  %v629_v34 = vpop.permute.xlu0 %628 }
  0xfd   : > { %v491_v46 = vmul.f32 0.1, %v463_v44  ;;  %v498_v50 = vmax.f32 %v460_v37, %v490_v43  ;;  %v634_v37 = vpop.permute.xlu1 %633 }
  0xfe   : > { %v501_v48 = vmax.f32 %v471_v40, %v493_v45 }
  0xff   : > { %v499_v51 = vmax.f32 %v463_v44, %v491_v46  ;;  %v755_v52 = vpop.f32.mrb[4].mxu0  ;;  %v650_v46 = vstv %s649_s26 }
 0x100   : > { %v484_v53 = vadd.f32 %v755_v52, %v373_v49  ;;  %v475_v54 = vpop.f32.mrb[5].mxu0  ;;  %v511_v55 = vpack.c.bf16 %v501_v48, %v500_v47 }
 0x101   : > { %v476_v57 = vadd.f32 %v475_v54, %v363_v36  ;;  %v756_v58 = vpop.f32.mrb[6].mxu0  ;;  %v510_v59 = vpack.c.bf16 %v499_v51, %v498_v50 }
 0x102   : > { %v496_v60 = vmul.f32 0.1, %v484_v53  ;;  %v487_v61 = vadd.f32 %v756_v58, %v378_v56  ;;  %v478_v62 = vpop.f32.mrb[7].mxu0 }
 0x103   : > { %v494_v63 = vmul.f32 0.1, %v476_v57  ;;  %v479_v0 = vadd.f32 %v478_v62, %v368_v42  ;;  %757 = vmatprep.subr.bf16.mxu1 %v510_v59 }
 0x104   : > { %v497_v1 = vmul.f32 0.1, %v487_v61  ;;  %758 = vmatpush3.bf16.msra.mxu1 %v510_v59  ;;  %v504_v3 = vmax.f32 %v484_v53, %v496_v60 }
 0x105   : > { %v495_v2 = vmul.f32 0.1, %v479_v0  ;;  %759 = vmatprep.subr.bf16.mxu1 %v511_v55  ;;  %v502_v5 = vmax.f32 %v476_v57, %v494_v63 }
 0x106   : > { %v505_v4 = vmax.f32 %v487_v61, %v497_v1 }
 0x107   : > { %v503_v6 = vmax.f32 %v479_v0, %v495_v2 }
 0x108   : > { %760 = vmatpush3.bf16.msra.mxu1 %v511_v55  ;;  %v513_v7 = vpack.c.bf16 %v505_v4, %v504_v3 }
 0x109   : > { %v512_v8 = vpack.c.bf16 %v503_v6, %v502_v5 }
 0x10b   : > { %761 = vmatprep.subr.bf16.mxu1 %v512_v8 }
 0x10c   : > { %762 = vmatpush3.bf16.msra.mxu1 %v512_v8 }
 0x10d   : > { %763 = vmatprep.subr.bf16.mxu1 %v513_v7 }
 0x110   : > { %764 = vmatpush3.bf16.msra.mxu1 %v513_v7 }
 0x113   : > { %766 = vmatmul.mubr.msk.bf16.vlgmr.msra.gmra.mrb[0].mxu1 %vm548_vm3, %v803_v9 }
 0x1e6   : > { %v767_v13 = vpop.f32.mrb[0].mxu1 }
 0x1e7   : > { %v598_v15 = vadd.f32 %v767_v13, %v531_v12  ;;  %v589_v16 = vpop.f32.mrb[1].mxu1 }
 0x1e8   : > { %v590_v17 = vadd.f32 %v589_v16, %v521_v10  ;;  %v768_v18 = vpop.f32.mrb[2].mxu1 }
 0x1e9   : > { %v601_v19 = vadd.f32 %v768_v18, %v536_v14  ;;  %v592_v20 = vpop.f32.mrb[3].mxu1  ;;  %v606_v21 = vmul.f32 0.1, %v598_v15 }
 0x1ea   : > { %v604_v22 = vmul.f32 0.1, %v590_v17  ;;  %v593_v23 = vadd.f32 %v592_v20, %v526_v11 }
 0x1eb   : > { %v607_v26 = vmul.f32 0.1, %v601_v19  ;;  %v610_v29 = vmax.f32 %v598_v15, %v606_v21 }
 0x1ec   : > { %v608_v25 = vmax.f32 %v590_v17, %v604_v22  ;;  %v605_v27 = vmul.f32 0.1, %v593_v23 }
 0x1ed   : > { %v611_v32 = vmax.f32 %v601_v19, %v607_v26  ;;  %v638_v35 = vmul.f32 %v629_v34, %v610_v29 }
 0x1ee   : > { %v609_v30 = vmax.f32 %v593_v23, %v605_v27  ;;  %v636_v31 = vmul.f32 %v619_v24, %v608_v25 }
 0x1ef   : > { %v639_v38 = vmul.f32 %v634_v37, %v611_v32 }
 0x1f0   : > { %v637_v33 = vmul.f32 %v624_v28, %v609_v30 }
 0x1f2   : > { %v640_v36 = vadd.f32 %v637_v33, %v636_v31 }
 0x1f4   : > { %v641_v39 = vadd.f32 %v640_v36, %v638_v35 }
 0x1f6   : > { %v642_v40 = vadd.f32 %v641_v39, %v639_v38 }
 0x1f8   : > { %v643_v41 = vrot.slane %v642_v40, 4 }
 0x1fa   : > { %v644_v42 = vadd.f32 %v643_v41, %v642_v40 }
 0x1fc   : > { %v645_v43 = vrot.slane %v644_v42, 2 }
 0x1fe   : > { %v646_v44 = vadd.f32 %v645_v43, %v644_v42 }
 0x200   : > { %v647_v45 = vrot.slane %v646_v44, 1 }
 0x202   : > { %v648_v47 = vadd.f32 %v647_v45, %v646_v44 }
 0x204   : > { %v651_v48 = vadd.f32 %v650_v46, %v648_v47 }
 0x206   : > { %v733_v49 = vmul.f32 -1.442695, %v651_v48 }
 0x208   : > { %804 = vpow2.f32 %v733_v49 }
 0x212   : > { %v805_v50 = vpop.eup %804 }
 0x213   : > { %v655_v51 = vadd.f32 1.0, %v805_v50 }
 0x215   : > { %806 = vrcp.f32 %v655_v51 }
 0x21f   : > { %v807_v52 = vpop.eup %806 }
 0x220   : > { %658 = vst [vmem:[%s320_s10] sm:$0x1] %v807_v52 }
 0x221 PF: > { %p15_p9 = scmp.ge.s32.totalorder %s894_s29, 4   ;;  %s1011_s26 = smov %s826_s27 }
 0x222   : > { %s1012_s27 = smov %s903_s9  ;;  %s1013_s28 = smov %s894_s29 }
 0x223   :  { %17 = sbr.rel (!%p15_p9) target bundleno = 4 (0x4), region = 124 }

</bundles_post_ra>
